<compile_context>
chip_gen: v5e
topology: v5e:2x2
jax: 0.10.0
libtpu: 0.0.40
codegen_flags: <defaults>
</compile_context>

<pallas_src>
import functools

import jax
import jax.numpy as jnp
from jax.experimental import pallas as pl
from jax.experimental.pallas import tpu as pltpu

LN_EPS = 1e-5
_WEIGHT_CHUNK_BUDGET = 8 * 1024 * 1024   # bytes per weight chunk (x2 when double-buffered)
_SUBLANE = 8


def adapter_proj_kernel(x_ref, w_ref, b_ref, gamma_ref, beta_ref, o_ref,
                        *, tokens_per_block, cross_attention_dim):
    """One grid step = one chunk of `tokens_per_block` output tokens.

    x_ref:     (B_pad, H)                  full (padded) cond_embeds
    w_ref:     (H, tokens_per_block*C)     column block of the projection weight
    b_ref:     (1, tokens_per_block*C)     bias slice for this chunk (f32)
    gamma_ref: (1, C)                      LayerNorm weight (f32)
    beta_ref:  (1, C)                      LayerNorm bias (f32)
    o_ref:     (B_pad, tokens_per_block*C) lane-dense output slab for this chunk
    """
    C = cross_attention_dim

    # Linear: native-dtype operands (bf16-friendly), f32 accumulation on the MXU.
    y = jnp.dot(x_ref[...], w_ref[...], preferred_element_type=jnp.float32)
    y = y + b_ref[...]                       # (1, chunk*C) broadcast over rows

    gamma = gamma_ref[...]                   # (1, C) f32
    beta = beta_ref[...]                     # (1, C) f32
    inv_c = jnp.float32(1.0 / C)

    # Per-token LayerNorm over static 128-lane-aligned slices; each normalized slice is
    # stored directly (no concat buffer -> bounded live ranges, no vreg-spill blowup).
    for t in range(tokens_per_block):
        yt = y[:, t * C:(t + 1) * C]                       # (B_pad, C) f32
        mean = jnp.sum(yt, axis=-1, keepdims=True) * inv_c
        diff = yt - mean                                   # reused for variance (two-pass,
        var = jnp.sum(diff * diff, axis=-1, keepdims=True) * inv_c  # numerically stable)
        y_hat = diff * jax.lax.rsqrt(var + LN_EPS)
        o_ref[:, t * C:(t + 1) * C] = (y_hat * gamma + beta).astype(o_ref.dtype)


def _choose_tokens_per_block(T, C, H, itemsize):
    """Largest divisor of T whose weight chunk fits the per-chunk VMEM budget."""
    best = 1
    for d in range(1, T + 1):
        if T % d == 0 and H * d * C * itemsize <= _WEIGHT_CHUNK_BUDGET:
            best = d
    return best


@functools.partial(jax.jit, static_argnames=("num_tokens", "param_dtype"))
def vision_adapter_forward(cond_embeds, w, b, gamma, beta, *, num_tokens, param_dtype=None):
    """cond_embeds: [B, H]; w: [H, T*C]; b: [T*C]; gamma/beta: [C] -> [B, T, C].

    param_dtype=jnp.bfloat16 is the recommended production setting (halves weight DMA
    bytes, native MXU path on v5e/v6e/v7x); accumulation and LN stay in f32.
    """
    B, H = cond_embeds.shape
    TC = w.shape[1]
    T = num_tokens
    C = TC // T
    assert T * C == TC, (T, C, TC)
    assert C % 128 == 0, "cross_attention_dim must be a multiple of 128 (lane width)"

    out_dtype = cond_embeds.dtype

    x = cond_embeds
    if param_dtype is not None:
        x = x.astype(param_dtype)
        w = w.astype(param_dtype)

    # Pad batch to a sublane multiple (cheap; sliced off after). NOTE: the kernel is
    # weight-DMA bound at small B -- batch as many rows as possible per call.
    B_pad = ((B + _SUBLANE - 1) // _SUBLANE) * _SUBLANE
    if B_pad != B:
        x = jnp.pad(x, ((0, B_pad - B), (0, 0)))

    # VMEM-aware column chunking: one fat step when it fits (no per-step overhead on
    # single-TC chips); finer chunks only for VMEM fit / DMA-compute overlap.
    tokens_per_block = _choose_tokens_per_block(T, C, H, jnp.dtype(w.dtype).itemsize)
    nc = T // tokens_per_block
    block_cols = tokens_per_block * C

    # One-time tiny casts / reshapes on the host-graph side.
    b_row = b.reshape(1, TC).astype(jnp.float32)
    gamma_row = gamma.reshape(1, C).astype(jnp.float32)
    beta_row = beta.reshape(1, C).astype(jnp.float32)

    kernel = functools.partial(
        adapter_proj_kernel,
        tokens_per_block=tokens_per_block,
        cross_attention_dim=C,
    )

    x_itemsize = jnp.dtype(x.dtype).itemsize
    w_itemsize = jnp.dtype(w.dtype).itemsize
    o_itemsize = jnp.dtype(out_dtype).itemsize

    # Scoped-VMEM budget: double-buffered blocks + headroom, clamped for v7x's 64 MiB cap.
    vmem_needed = (2 * B_pad * H * x_itemsize
                   + 2 * H * block_cols * w_itemsize
                   + 2 * block_cols * 4
                   + 4 * C * 4
                   + 2 * B_pad * block_cols * o_itemsize)
    vmem_limit = int(min(max(vmem_needed + (4 << 20), 16 << 20), 64 << 20))

    cost = pl.CostEstimate(
        flops=2 * B_pad * H * TC,
        transcendentals=0,
        bytes_accessed=(B_pad * H * x_itemsize + H * TC * w_itemsize
                        + TC * 4 + 2 * C * 4 + B_pad * TC * o_itemsize),
    )

    out_flat = pl.pallas_call(
        kernel,
        out_shape=jax.ShapeDtypeStruct((B_pad, TC), out_dtype),
        grid_spec=pltpu.PrefetchScalarGridSpec(
            num_scalar_prefetch=0,
            grid=(nc,),
            in_specs=[
                pl.BlockSpec((B_pad, H), lambda i: (0, 0)),            # cond_embeds (full)
                pl.BlockSpec((H, block_cols), lambda i: (0, i)),       # weight chunk i
                pl.BlockSpec((1, block_cols), lambda i: (0, i)),       # bias chunk i
                pl.BlockSpec((1, C), lambda i: (0, 0)),                # LN gamma
                pl.BlockSpec((1, C), lambda i: (0, 0)),                # LN beta
            ],
            out_specs=pl.BlockSpec((B_pad, block_cols), lambda i: (0, i)),
        ),
        compiler_params=pltpu.CompilerParams(
            # Column chunks are independent; on v7x, true 2-TC sharding would use
            # CORE_PARALLEL / core_map — kept portable here.
            dimension_semantics=("parallel",),
            vmem_limit_bytes=vmem_limit,
        ),
        cost_estimate=cost,
    )(x, w, b_row, gamma_row, beta_row)

    # Slice off batch padding; reshape to [B, T, C] is metadata-only (lane-dense layout).
    return out_flat[:B].reshape(B, T, C)


def reference_forward(cond_embeds, w, b, gamma, beta, num_tokens):
    B = cond_embeds.shape[0]
    C = w.shape[1] // num_tokens
    y = cond_embeds.astype(jnp.float32) @ w.astype(jnp.float32) + b.astype(jnp.float32)
    y = y.reshape(B, num_tokens, C)
    mean = jnp.mean(y, axis=-1, keepdims=True)
    var = jnp.mean((y - mean) ** 2, axis=-1, keepdims=True)
    y = (y - mean) * jax.lax.rsqrt(var + LN_EPS)
    return y * gamma + beta


if __name__ == "__main__":
    # Small config consistent with the module:
    #   hidden_size (CLIP embed dim) = 32, num_tokens = 4, cross_attention_dim = 128
    B, H = 2, 32
    T, C = 4, 128

    key = jax.random.PRNGKey(0)
    k_x, k_w = jax.random.split(key)

    cond_embeds = jax.random.normal(k_x, (B, H), dtype=jnp.float32)

    # Deterministic synthetic params (per _init_weights): Linear ~N(0,0.02), bias=0;
    # LayerNorm gamma=1, beta=0.
    w = 0.02 * jax.random.normal(k_w, (H, T * C), dtype=jnp.float32)
    b = jnp.zeros((T * C,), dtype=jnp.float32)
    gamma = jnp.ones((C,), dtype=jnp.float32)
    beta = jnp.zeros((C,), dtype=jnp.float32)

    ref = reference_forward(cond_embeds, w, b, gamma, beta, T)

    # f32 path (tight tolerance).
    out = vision_adapter_forward(cond_embeds, w, b, gamma, beta, num_tokens=T)
    out = jax.block_until_ready(out)
    assert out.shape == (B, T, C), out.shape
    assert jnp.allclose(out, ref, atol=1e-4, rtol=1e-4)

    # bf16 operand path (production default per perf review) -- f32 accumulation/LN.
    out_bf16 = vision_adapter_forward(cond_embeds, w, b, gamma, beta,
                                      num_tokens=T, param_dtype=jnp.bfloat16)
    out_bf16 = jax.block_until_ready(out_bf16)
    assert out_bf16.shape == (B, T, C), out_bf16.shape
    assert jnp.allclose(out_bf16, ref, atol=5e-2, rtol=5e-2)

    print("KERNEL_OK")
</pallas_src>

<mosaic_0001>
module attributes {stable_mosaic.version = 11 : i64} {
  func.func @adapter_proj_kernel(%arg0: i32, %arg1: memref<8x32xf32, #tpu.memory_space<vmem>>, %arg2: memref<32x512xf32, #tpu.memory_space<vmem>>, %arg3: memref<1x512xf32, #tpu.memory_space<vmem>>, %arg4: memref<1x128xf32, #tpu.memory_space<vmem>>, %arg5: memref<1x128xf32, #tpu.memory_space<vmem>>, %arg6: memref<8x512xf32, #tpu.memory_space<vmem>>) attributes {dimension_semantics = [#tpu.dimension_semantics<parallel>], iteration_bounds = array<i64: 1>, scalar_prefetch = 0 : i64, scratch_operands = 0 : i64, tpu.core_type = #tpu.core_type<tc>, window_params = [{pipeline_mode = #tpu.pipeline_mode<synchronous>, transform_indices = @transform_0, window_bounds = array<i64: 8, 32>}, {transform_indices = @transform_1, window_bounds = array<i64: 32, 512>}, {transform_indices = @transform_2, window_bounds = array<i64: 1, 512>}, {pipeline_mode = #tpu.pipeline_mode<synchronous>, transform_indices = @transform_3, window_bounds = array<i64: 1, 128>}, {pipeline_mode = #tpu.pipeline_mode<synchronous>, transform_indices = @transform_4, window_bounds = array<i64: 1, 128>}, {transform_indices = @transform_5, window_bounds = array<i64: 8, 512>}]} {
    %c0 = arith.constant 0 : index
    %c0_0 = arith.constant 0 : index
    %0 = vector.load %arg1[%c0, %c0_0] : memref<8x32xf32, #tpu.memory_space<vmem>>, vector<8x32xf32>
    %c0_1 = arith.constant 0 : index
    %c0_2 = arith.constant 0 : index
    %1 = vector.load %arg2[%c0_1, %c0_2] : memref<32x512xf32, #tpu.memory_space<vmem>>, vector<32x512xf32>
    %cst = arith.constant dense<0.000000e+00> : vector<8x512xf32>
    %2 = tpu.matmul %0, %1, %cst {dimension_numbers = #tpu.dot_dimension_numbers<[1], [0], [0], [1], [0, 0, 1, 1], [], []>} : vector<8x32xf32>, vector<32x512xf32>, vector<8x512xf32> -> vector<8x512xf32>
    %c0_3 = arith.constant 0 : index
    %c0_4 = arith.constant 0 : index
    %3 = vector.load %arg3[%c0_3, %c0_4] : memref<1x512xf32, #tpu.memory_space<vmem>>, vector<1x512xf32>
    %4 = vector.broadcast %3 : vector<1x512xf32> to vector<8x512xf32>
    %5 = arith.addf %2, %4 : vector<8x512xf32>
    %c0_5 = arith.constant 0 : index
    %c0_6 = arith.constant 0 : index
    %6 = vector.load %arg4[%c0_5, %c0_6] : memref<1x128xf32, #tpu.memory_space<vmem>>, vector<1x128xf32>
    %c0_7 = arith.constant 0 : index
    %c0_8 = arith.constant 0 : index
    %7 = vector.load %arg5[%c0_7, %c0_8] : memref<1x128xf32, #tpu.memory_space<vmem>>, vector<1x128xf32>
    %8 = vector.extract_strided_slice %5 {offsets = [0, 0], sizes = [8, 128], strides = [1, 1]} : vector<8x512xf32> to vector<8x128xf32>
    %cst_9 = arith.constant dense<0.000000e+00> : vector<8xf32>
    %9 = vector.multi_reduction <add>, %8, %cst_9 [1] : vector<8x128xf32> to vector<8xf32>
    %10 = vector.shape_cast %9 : vector<8xf32> to vector<8x1xf32>
    %cst_10 = arith.constant 7.812500e-03 : f32
    %11 = vector.broadcast %cst_10 : f32 to vector<8x1xf32>
    %12 = arith.mulf %10, %11 : vector<8x1xf32>
    %13 = vector.broadcast %12 : vector<8x1xf32> to vector<8x128xf32>
    %14 = arith.subf %8, %13 : vector<8x128xf32>
    %15 = arith.mulf %14, %14 : vector<8x128xf32>
    %cst_11 = arith.constant dense<0.000000e+00> : vector<8xf32>
    %16 = vector.multi_reduction <add>, %15, %cst_11 [1] : vector<8x128xf32> to vector<8xf32>
    %17 = vector.shape_cast %16 : vector<8xf32> to vector<8x1xf32>
    %cst_12 = arith.constant 7.812500e-03 : f32
    %18 = vector.broadcast %cst_12 : f32 to vector<8x1xf32>
    %19 = arith.mulf %17, %18 : vector<8x1xf32>
    %cst_13 = arith.constant 9.99999974E-6 : f32
    %20 = vector.broadcast %cst_13 : f32 to vector<8x1xf32>
    %21 = arith.addf %19, %20 : vector<8x1xf32>
    %22 = math.rsqrt %21 : vector<8x1xf32>
    %23 = vector.broadcast %22 : vector<8x1xf32> to vector<8x128xf32>
    %24 = arith.mulf %14, %23 : vector<8x128xf32>
    %25 = vector.broadcast %6 : vector<1x128xf32> to vector<8x128xf32>
    %26 = arith.mulf %24, %25 : vector<8x128xf32>
    %27 = vector.broadcast %7 : vector<1x128xf32> to vector<8x128xf32>
    %28 = arith.addf %26, %27 : vector<8x128xf32>
    %c0_14 = arith.constant 0 : index
    %c0_15 = arith.constant 0 : index
    %29 = vector.load %arg6[%c0_14, %c0_15] : memref<8x512xf32, #tpu.memory_space<vmem>>, vector<8x128xf32>
    tpu.vector_store %arg6[%c0_14, %c0_15], %28 {strides = array<i32>} : memref<8x512xf32, #tpu.memory_space<vmem>>, vector<8x128xf32>,
    %30 = vector.extract_strided_slice %5 {offsets = [0, 128], sizes = [8, 128], strides = [1, 1]} : vector<8x512xf32> to vector<8x128xf32>
    %cst_16 = arith.constant dense<0.000000e+00> : vector<8xf32>
    %31 = vector.multi_reduction <add>, %30, %cst_16 [1] : vector<8x128xf32> to vector<8xf32>
    %32 = vector.shape_cast %31 : vector<8xf32> to vector<8x1xf32>
    %cst_17 = arith.constant 7.812500e-03 : f32
    %33 = vector.broadcast %cst_17 : f32 to vector<8x1xf32>
    %34 = arith.mulf %32, %33 : vector<8x1xf32>
    %35 = vector.broadcast %34 : vector<8x1xf32> to vector<8x128xf32>
    %36 = arith.subf %30, %35 : vector<8x128xf32>
    %37 = arith.mulf %36, %36 : vector<8x128xf32>
    %cst_18 = arith.constant dense<0.000000e+00> : vector<8xf32>
    %38 = vector.multi_reduction <add>, %37, %cst_18 [1] : vector<8x128xf32> to vector<8xf32>
    %39 = vector.shape_cast %38 : vector<8xf32> to vector<8x1xf32>
    %cst_19 = arith.constant 7.812500e-03 : f32
    %40 = vector.broadcast %cst_19 : f32 to vector<8x1xf32>
    %41 = arith.mulf %39, %40 : vector<8x1xf32>
    %cst_20 = arith.constant 9.99999974E-6 : f32
    %42 = vector.broadcast %cst_20 : f32 to vector<8x1xf32>
    %43 = arith.addf %41, %42 : vector<8x1xf32>
    %44 = math.rsqrt %43 : vector<8x1xf32>
    %45 = vector.broadcast %44 : vector<8x1xf32> to vector<8x128xf32>
    %46 = arith.mulf %36, %45 : vector<8x128xf32>
    %47 = vector.broadcast %6 : vector<1x128xf32> to vector<8x128xf32>
    %48 = arith.mulf %46, %47 : vector<8x128xf32>
    %49 = vector.broadcast %7 : vector<1x128xf32> to vector<8x128xf32>
    %50 = arith.addf %48, %49 : vector<8x128xf32>
    %c0_21 = arith.constant 0 : index
    %c128 = arith.constant 128 : index
    %51 = vector.load %arg6[%c0_21, %c128] : memref<8x512xf32, #tpu.memory_space<vmem>>, vector<8x128xf32>
    tpu.vector_store %arg6[%c0_21, %c128], %50 {strides = array<i32>} : memref<8x512xf32, #tpu.memory_space<vmem>>, vector<8x128xf32>,
    %52 = vector.extract_strided_slice %5 {offsets = [0, 256], sizes = [8, 128], strides = [1, 1]} : vector<8x512xf32> to vector<8x128xf32>
    %cst_22 = arith.constant dense<0.000000e+00> : vector<8xf32>
    %53 = vector.multi_reduction <add>, %52, %cst_22 [1] : vector<8x128xf32> to vector<8xf32>
    %54 = vector.shape_cast %53 : vector<8xf32> to vector<8x1xf32>
    %cst_23 = arith.constant 7.812500e-03 : f32
    %55 = vector.broadcast %cst_23 : f32 to vector<8x1xf32>
    %56 = arith.mulf %54, %55 : vector<8x1xf32>
    %57 = vector.broadcast %56 : vector<8x1xf32> to vector<8x128xf32>
    %58 = arith.subf %52, %57 : vector<8x128xf32>
    %59 = arith.mulf %58, %58 : vector<8x128xf32>
    %cst_24 = arith.constant dense<0.000000e+00> : vector<8xf32>
    %60 = vector.multi_reduction <add>, %59, %cst_24 [1] : vector<8x128xf32> to vector<8xf32>
    %61 = vector.shape_cast %60 : vector<8xf32> to vector<8x1xf32>
    %cst_25 = arith.constant 7.812500e-03 : f32
    %62 = vector.broadcast %cst_25 : f32 to vector<8x1xf32>
    %63 = arith.mulf %61, %62 : vector<8x1xf32>
    %cst_26 = arith.constant 9.99999974E-6 : f32
    %64 = vector.broadcast %cst_26 : f32 to vector<8x1xf32>
    %65 = arith.addf %63, %64 : vector<8x1xf32>
    %66 = math.rsqrt %65 : vector<8x1xf32>
    %67 = vector.broadcast %66 : vector<8x1xf32> to vector<8x128xf32>
    %68 = arith.mulf %58, %67 : vector<8x128xf32>
    %69 = vector.broadcast %6 : vector<1x128xf32> to vector<8x128xf32>
    %70 = arith.mulf %68, %69 : vector<8x128xf32>
    %71 = vector.broadcast %7 : vector<1x128xf32> to vector<8x128xf32>
    %72 = arith.addf %70, %71 : vector<8x128xf32>
    %c0_27 = arith.constant 0 : index
    %c256 = arith.constant 256 : index
    %73 = vector.load %arg6[%c0_27, %c256] : memref<8x512xf32, #tpu.memory_space<vmem>>, vector<8x128xf32>
    tpu.vector_store %arg6[%c0_27, %c256], %72 {strides = array<i32>} : memref<8x512xf32, #tpu.memory_space<vmem>>, vector<8x128xf32>,
    %74 = vector.extract_strided_slice %5 {offsets = [0, 384], sizes = [8, 128], strides = [1, 1]} : vector<8x512xf32> to vector<8x128xf32>
    %cst_28 = arith.constant dense<0.000000e+00> : vector<8xf32>
    %75 = vector.multi_reduction <add>, %74, %cst_28 [1] : vector<8x128xf32> to vector<8xf32>
    %76 = vector.shape_cast %75 : vector<8xf32> to vector<8x1xf32>
    %cst_29 = arith.constant 7.812500e-03 : f32
    %77 = vector.broadcast %cst_29 : f32 to vector<8x1xf32>
    %78 = arith.mulf %76, %77 : vector<8x1xf32>
    %79 = vector.broadcast %78 : vector<8x1xf32> to vector<8x128xf32>
    %80 = arith.subf %74, %79 : vector<8x128xf32>
    %81 = arith.mulf %80, %80 : vector<8x128xf32>
    %cst_30 = arith.constant dense<0.000000e+00> : vector<8xf32>
    %82 = vector.multi_reduction <add>, %81, %cst_30 [1] : vector<8x128xf32> to vector<8xf32>
    %83 = vector.shape_cast %82 : vector<8xf32> to vector<8x1xf32>
    %cst_31 = arith.constant 7.812500e-03 : f32
    %84 = vector.broadcast %cst_31 : f32 to vector<8x1xf32>
    %85 = arith.mulf %83, %84 : vector<8x1xf32>
    %cst_32 = arith.constant 9.99999974E-6 : f32
    %86 = vector.broadcast %cst_32 : f32 to vector<8x1xf32>
    %87 = arith.addf %85, %86 : vector<8x1xf32>
    %88 = math.rsqrt %87 : vector<8x1xf32>
    %89 = vector.broadcast %88 : vector<8x1xf32> to vector<8x128xf32>
    %90 = arith.mulf %80, %89 : vector<8x128xf32>
    %91 = vector.broadcast %6 : vector<1x128xf32> to vector<8x128xf32>
    %92 = arith.mulf %90, %91 : vector<8x128xf32>
    %93 = vector.broadcast %7 : vector<1x128xf32> to vector<8x128xf32>
    %94 = arith.addf %92, %93 : vector<8x128xf32>
    %c0_33 = arith.constant 0 : index
    %c384 = arith.constant 384 : index
    %95 = vector.load %arg6[%c0_33, %c384] : memref<8x512xf32, #tpu.memory_space<vmem>>, vector<8x128xf32>
    tpu.vector_store %arg6[%c0_33, %c384], %94 {strides = array<i32>} : memref<8x512xf32, #tpu.memory_space<vmem>>, vector<8x128xf32>,
    return
  }
  func.func @transform_0(%arg0: i32) -> (i32, i32) {
    %c0_i32 = arith.constant 0 : i32
    %c0_i32_0 = arith.constant 0 : i32
    %c0_i32_1 = arith.constant 0 : i32
    return %c0_i32, %c0_i32_0 : i32, i32
  }
  func.func @transform_1(%arg0: i32) -> (i32, i32) {
    %c0_i32 = arith.constant 0 : i32
    %c0_i32_0 = arith.constant 0 : i32
    return %c0_i32, %arg0 : i32, i32
  }
  func.func @transform_2(%arg0: i32) -> (i32, i32) {
    %c0_i32 = arith.constant 0 : i32
    %c0_i32_0 = arith.constant 0 : i32
    return %c0_i32, %arg0 : i32, i32
  }
  func.func @transform_3(%arg0: i32) -> (i32, i32) {
    %c0_i32 = arith.constant 0 : i32
    %c0_i32_0 = arith.constant 0 : i32
    %c0_i32_1 = arith.constant 0 : i32
    return %c0_i32, %c0_i32_0 : i32, i32
  }
  func.func @transform_4(%arg0: i32) -> (i32, i32) {
    %c0_i32 = arith.constant 0 : i32
    %c0_i32_0 = arith.constant 0 : i32
    %c0_i32_1 = arith.constant 0 : i32
    return %c0_i32, %c0_i32_0 : i32, i32
  }
  func.func @transform_5(%arg0: i32) -> (i32, i32) {
    %c0_i32 = arith.constant 0 : i32
    %c0_i32_0 = arith.constant 0 : i32
    return %c0_i32, %arg0 : i32, i32
  }
}

</mosaic_0001>

<bundles_post_ra>
// kernel: vision_adapter_forward.1
= control target key start
LH: loop header
LB: loop body
LE: loop exit
PB: predicated region body
PF: predicated region fallthrough
CT: control target
= control target key end

     0   :  { %10 = vsyncpa [#allocation3], 0  ;;  %s295_s21 = smov [#allocation2]   ;;  %s296_s23 = smov 512   ;;  %s374_s0 = inlined_call_operand.vmem [shape: f32[8,32], index: 0, kind: input, shape index: {}]   ;;  %s375_s1 = inlined_call_operand.hbm [shape: f32[32,512], index: 1, kind: input, shape index: {}]   ;;  %s376_s2 = inlined_call_operand.vmem [shape: f32[1,512], index: 2, kind: input, shape index: {}]   ;;  %s377_s3 = inlined_call_operand.vmem [shape: f32[1,128], index: 3, kind: input, shape index: {}]   ;;  %s378_s4 = inlined_call_operand.vmem [shape: f32[1,128], index: 4, kind: input, shape index: {}]   ;;  %s379_s5 = inlined_call_operand.vmem [shape: f32[8,512], index: 5, kind: output, shape index: {}]  }
   0x1   :  { %s17_s20 = sshll.u32 %s375_s1, 4  ;;  %s19_s22 = sshll.u32 %s295_s21, 4  ;;  %s18_s20 = int_to_ptr.hbm [resolvable:$true] %s17_s20  ;;  %s20_s22 = int_to_ptr.vmem [resolvable:$true] %s19_s22 }
   0x2   :  { %s297_s24 = smov 32  }
   0x3   :  { %25 = dma.hbm_to_vmem [thread:$0]  %s18_s20, 2048, %s20_s22, [#allocation3], %s296_s23, %s296_s23, %s297_s24  }
   0x4   :  { %293 = dma.done.wait [#allocation3], 2048  }
   0x5   :  { %294 = vsyncadd [#allocation3], 4294965248  ;;  %v49_v0 = vld [vmem:[#allocation2 + $0x60] sm:$0xff]  ;;  %v51_v1 = vld [vmem:[#allocation2 + $0x70] sm:$0xff]  ;;  %vm63_vm0 = vcmask 261120  }
   0x6   :  { %v45_v2 = vld [vmem:[#allocation2 + $0x40] sm:$0xff]  ;;  %79 = vmatpush.msra.mxu0 %v49_v0  ;;  %119 = vmatpush.msra.mxu2 %v51_v1  ;;  %v47_v3 = vld [vmem:[#allocation2 + $0x50] sm:$0xff]  ;;  %v50_v6 = vld [vmem:[#allocation2 + $0x68] sm:$0xff] }
   0x7   :  { %v41_v4 = vld [vmem:[#allocation2 + $0x20] sm:$0xff]  ;;  %v43_v5 = vld [vmem:[#allocation2 + $0x30] sm:$0xff]  ;;  %v52_v7 = vld [vmem:[#allocation2 + $0x78] sm:$0xff]  ;;  %99 = vmatpush.msra.mxu1 %v50_v6 }
   0x8   :  { %80 = vmatpush.msra.mxu0 %v45_v2  ;;  %120 = vmatpush.msra.mxu2 %v47_v3  ;;  %v46_v8 = vld [vmem:[#allocation2 + $0x48] sm:$0xff]  ;;  %v37_v9 = vld [vmem:[#allocation2] sm:$0xff]  ;;  %v39_v10 = vld [vmem:[#allocation2 + $0x10] sm:$0xff] }
   0x9   :  { %139 = vmatpush.msra.mxu3 %v52_v7  ;;  %v48_v11 = vld [vmem:[#allocation2 + $0x58] sm:$0xff]  ;;  %v36_v12 = vld [vmem:[%s374_s0] sm:$0xff]  ;;  %v42_v13 = vld [vmem:[#allocation2 + $0x28] sm:$0xff]  ;;  %100 = vmatpush.msra.mxu1 %v46_v8 }
   0xa   :  { %81 = vmatpush.msra.mxu0 %v41_v4  ;;  %121 = vmatpush.msra.mxu2 %v43_v5  ;;  %v44_v14 = vld [vmem:[#allocation2 + $0x38] sm:$0xff]  ;;  %v38_v15 = vld [vmem:[#allocation2 + $0x8] sm:$0xff]  ;;  %v53_v17 = vld [vmem:[%s376_s2] sm:$0xf] }
   0xb   :  { %140 = vmatpush.msra.mxu3 %v48_v11  ;;  %v40_v16 = vld [vmem:[#allocation2 + $0x18] sm:$0xff]  ;;  %101 = vmatpush.msra.mxu1 %v42_v13  ;;  %v55_v18 = vperm.slane %v53_v17, 0  ;;  %v57_v21 = vperm.slane %v53_v17, 2  ;;  %v56_v22 = vperm.slane %v53_v17, 1  ;;  %v58_v27 = vperm.slane %v53_v17, 3 }
   0xc   :  { %82 = vmatpush.msra.mxu0 %v37_v9  ;;  %122 = vmatpush.msra.mxu2 %v39_v10  ;;  %v259_v5 = vld [vmem:[%s377_s3] ss:$0 sm:$0xff] }
   0xd   :  { %252 = vmatmul.msk.f32.vlgmr.msra.gmra.mxu0 %vm63_vm0, %v36_v12  ;;  %254 = vmatmul.msk.f32.vlgmr.msra.gmra.mxu2 %vm63_vm0, %v36_v12  ;;  %v260_v9 = vld [vmem:[%s378_s4] ss:$0 sm:$0xff] }
   0xe   :  { %141 = vmatpush.msra.mxu3 %v44_v14  ;;  %102 = vmatpush.msra.mxu1 %v38_v15 }
   0xf   :  { %253 = vmatmul.msk.f32.vlgmr.msra.gmra.mxu1 %vm63_vm0, %v36_v12 }
  0x10   :  { %142 = vmatpush.msra.mxu3 %v40_v16 }
  0x11   :  { %255 = vmatmul.msk.f32.vlgmr.msra.gmra.mxu3 %vm63_vm0, %v36_v12 }
  0x8a   :  { %v84_v19 = vpop.f32.mrf.mxu0 }
  0x8b   :  { %v85_v20 = vadd.f32 %v84_v19, %v55_v18 }
  0x8c   :  { %v104_v23 = vpop.f32.mrf.mxu1 }
  0x8d   :  { %149 = vadd.xlane.f32.xlu0 %v85_v20  ;;  %v105_v26 = vadd.f32 %v104_v23, %v56_v22 }
  0x90   :  { %v124_v24 = vpop.f32.mrf.mxu2 }
  0x91   :  { %v125_v25 = vadd.f32 %v124_v24, %v57_v21 }
  0x93   :  { %201 = vadd.xlane.f32.xlu1 %v125_v25 }
  0x94   :  { %v144_v28 = vpop.f32.mrf.mxu3 }
  0x95   :  { %178 = vadd.xlane.f32.xlu0 %v105_v26  ;;  %v145_v29 = vadd.f32 %v144_v28, %v58_v27 }
  0x9b   :  { %224 = vadd.xlane.f32.xlu1 %v145_v29 }
 0x100   :  { %v150_v30 = vpop.xlane.xlu0 %149 }
 0x101   :  { %v151_v31 = vmul.f32 0.0078125, %v150_v30 }
 0x103   :  { %v152_v32 = vsub.f32 %v85_v20, %v151_v31 }
 0x105   :  { %v153_v33 = vmul.f32 %v152_v32, %v152_v32 }
 0x106   :  { %v202_v34 = vpop.xlane.xlu1 %201 }
 0x107   :  { %v203_v35 = vmul.f32 0.0078125, %v202_v34  ;;  %154 = vadd.xlane.f32.xlu2 %v153_v33 }
 0x108   :  { %v179_v36 = vpop.xlane.xlu0 %178 }
 0x109   :  { %v341_v37 = vsub.f32 %v125_v25, %v203_v35  ;;  %v180_v38 = vmul.f32 0.0078125, %v179_v36 }
 0x10b   :  { %v343_v39 = vsub.f32 %v105_v26, %v180_v38  ;;  %v205_v40 = vmul.f32 %v341_v37, %v341_v37 }
 0x10d   :  { %206 = vadd.xlane.f32.xlu0 %v205_v40  ;;  %v182_v41 = vmul.f32 %v343_v39, %v343_v39 }
 0x10e   :  { %v225_v42 = vpop.xlane.xlu1 %224 }
 0x10f   :  { %v226_v43 = vmul.f32 0.0078125, %v225_v42  ;;  %183 = vadd.xlane.f32.xlu2 %v182_v41 }
 0x111   :  { %v349_v44 = vsub.f32 %v145_v29, %v226_v43 }
 0x113   :  { %v228_v45 = vmul.f32 %v349_v44, %v349_v44 }
 0x115   :  { %229 = vadd.xlane.f32.xlu1 %v228_v45 }
 0x17a   :  { %v155_v46 = vpop.xlane.xlu2 %154 }
 0x17b   :  { %v156_v47 = vmul.f32 0.0078125, %v155_v46 }
 0x17d   :  { %v157_v48 = vadd.f32 1e-05, %v156_v47 }
 0x17f   :  { %261 = vrsqrt.f32 %v157_v48  ;;  %vm164_vm2 = vweird.f32 %v157_v48 }
 0x180   :  { %v207_v49 = vpop.xlane.xlu0 %206 }
 0x181   :  { %v208_v50 = vmul.f32 0.0078125, %v207_v49 }
 0x182   :  { %v184_v51 = vpop.xlane.xlu2 %183 }
 0x183   :  { %v209_v52 = vadd.f32 1e-05, %v208_v50  ;;  %v185_v53 = vmul.f32 0.0078125, %v184_v51 }
 0x185   :  { %v262_v54 = vpop.eup %261  ;;  %263 = vrsqrt.f32 %v209_v52  ;;  %v186_v55 = vadd.f32 1e-05, %v185_v53  ;;  %vm216_vm5 = vweird.f32 %v209_v52 }
 0x186   :  { %v159_v56 = vmul.f32 %v262_v54, %v157_v48  ;;  %vm165_vm1 = vweird.f32 %v262_v54 }
 0x187   :  { %265 = vrsqrt.f32 %v186_v55  ;;  %vm166_vm3 = vmor %vm164_vm2, %vm165_vm1  ;;  %vm193_vm8 = vweird.f32 %v186_v55 }
 0x188   :  { %v160_v57 = vmul.f32 %v262_v54, %v159_v56  ;;  %v230_v58 = vpop.xlane.xlu1 %229 }
 0x189   :  { %v231_v59 = vmul.f32 0.0078125, %v230_v58 }
 0x18a   :  { %v161_v60 = vmul.f32 0.5, %v160_v57 }
 0x18b   :  { %v264_v61 = vpop.eup %263  ;;  %v232_v62 = vadd.f32 1e-05, %v231_v59 }
 0x18c   :  { %v162_v63 = vsub.f32 1.5, %v161_v60  ;;  %v211_v0 = vmul.f32 %v264_v61, %v209_v52  ;;  %vm217_vm4 = vweird.f32 %v264_v61 }
 0x18d   :  { %v266_v1 = vpop.eup %265  ;;  %267 = vrsqrt.f32 %v232_v62  ;;  %vm218_vm7 = vmor %vm216_vm5, %vm217_vm4  ;;  %vm239_vm11 = vweird.f32 %v232_v62 }
 0x18e   :  { %v163_v2 = vmul.f32 %v262_v54, %v162_v63  ;;  %v212_v3 = vmul.f32 %v264_v61, %v211_v0  ;;  %v188_v4 = vmul.f32 %v266_v1, %v186_v55  ;;  %vm194_vm6 = vweird.f32 %v266_v1 }
 0x18f   :  { %vm195_vm9 = vmor %vm193_vm8, %vm194_vm6 }
 0x190   :  { %v167_v6 = vsel %vm166_vm3, %v262_v54, %v163_v2  ;;  %v213_v7 = vmul.f32 0.5, %v212_v3  ;;  %v189_v8 = vmul.f32 %v266_v1, %v188_v4 }
 0x191   :  { %v168_v10 = vmul.f32 %v167_v6, %v152_v32 }
 0x192   :  { %v214_v11 = vsub.f32 1.5, %v213_v7  ;;  %v190_v12 = vmul.f32 0.5, %v189_v8 }
 0x193   :  { %v268_v13 = vpop.eup %267  ;;  %v172_v14 = vmul.f32 %v259_v5, %v168_v10 }
 0x194   :  { %v215_v15 = vmul.f32 %v264_v61, %v214_v11  ;;  %v191_v16 = vsub.f32 1.5, %v190_v12  ;;  %v234_v17 = vmul.f32 %v268_v13, %v232_v62  ;;  %vm240_vm10 = vweird.f32 %v268_v13 }
 0x195   :  { %v176_v18 = vadd.f32 %v260_v9, %v172_v14  ;;  %vm241_vm12 = vmor %vm239_vm11, %vm240_vm10 }
 0x196   :  { %v219_v19 = vsel %vm218_vm7, %v264_v61, %v215_v15  ;;  %v192_v20 = vmul.f32 %v266_v1, %v191_v16  ;;  %v235_v21 = vmul.f32 %v268_v13, %v234_v17 }
 0x197   :  { %177 = vst [vmem:[%s379_s5] sm:$0xff] %v176_v18  ;;  %v220_v22 = vmul.f32 %v219_v19, %v341_v37 }
 0x198   :  { %v196_v23 = vsel %vm195_vm9, %v266_v1, %v192_v20  ;;  %v236_v24 = vmul.f32 0.5, %v235_v21 }
 0x199   :  { %v221_v25 = vmul.f32 %v259_v5, %v220_v22  ;;  %v197_v26 = vmul.f32 %v196_v23, %v343_v39 }
 0x19a   :  { %v237_v27 = vsub.f32 1.5, %v236_v24 }
 0x19b   :  { %v222_v28 = vadd.f32 %v260_v9, %v221_v25  ;;  %v198_v29 = vmul.f32 %v259_v5, %v197_v26 }
 0x19c   :  { %v238_v30 = vmul.f32 %v268_v13, %v237_v27 }
 0x19d   :  { %223 = vst [vmem:[%s379_s5 + $0x10] sm:$0xff] %v222_v28  ;;  %v199_v31 = vadd.f32 %v260_v9, %v198_v29 }
 0x19e   :  { %v242_v32 = vsel %vm241_vm12, %v268_v13, %v238_v30 }
 0x19f   :  { %200 = vst [vmem:[%s379_s5 + $0x8] sm:$0xff] %v199_v31  ;;  %v243_v33 = vmul.f32 %v242_v32, %v349_v44 }
 0x1a1   :  { %v244_v34 = vmul.f32 %v259_v5, %v243_v33 }
 0x1a3   :  { %v245_v35 = vadd.f32 %v260_v9, %v244_v34 }
 0x1a5   :  { %246 = vst [vmem:[%s379_s5 + $0x18] sm:$0xff] %v245_v35 }
 0x1a6   :  { %251 = vsyncpa [#allocation3], 1 }

</bundles_post_ra>
